<compile_context>
chip_gen: v7x
topology: tpu7x:2x2x1
jax: 0.10.0
libtpu: 0.0.40
codegen_flags: <defaults>
</compile_context>

<pallas_src>
import functools

import jax
import jax.numpy as jnp
from jax.experimental import pallas as pl
from jax.experimental.pallas import tpu as pltpu

Z_DIM = 64
IN_DIM = 6
HIDDEN = (512, 256, 128)
LEAK = 0.1
_LANE = 128
_SUBLANE = 8
_MAX_BT = 2048           # keep working set < v5e's 16 MiB scoped-VMEM default
_SPLIT_MIN_ROWS = 256    # force >= 2 grid steps above this (v7x: 2 TCs/chip)


def _round_up(n, m):
    return ((n + m - 1) // m) * m


def _cdiv(a, b):
    return -(-a // b)


def _leaky_relu(x, negative_slope=LEAK):
    return jnp.where(x > 0, x, negative_slope * x)


def _layer_mxu(h, w_ref, b_ref):
    # Matmul in the weight dtype (bf16 for full-rate MXU + half the DMA), f32
    # accumulation on the MXU; bias add + LeakyReLU stay f32 on the VPU.
    acc = jnp.dot(h.astype(w_ref.dtype), w_ref[...],
                  preferred_element_type=jnp.float32)
    return _leaky_relu(acc + b_ref[...].astype(jnp.float32))


def _layer1_vpu(h, w_ref, b_ref):
    # (bt, 6) @ (6, 512) as 6 broadcast multiply-adds on the VPU: MXU-pass
    # cost is independent of K, so keeping this tiny-K layer off the MXU frees
    # a full pass per step while the VPU has slack. Inputs are quantized to
    # the weight dtype first so the arithmetic matches the MXU path/reference.
    xq = h.astype(w_ref.dtype).astype(jnp.float32)          # (bt, 6)
    w = w_ref[...].astype(jnp.float32)                      # (6, out)
    acc = xq[:, 0:1] * w[0:1, :]
    for k in range(1, IN_DIM):
        acc = acc + xq[:, k:k + 1] * w[k:k + 1, :]
    return _leaky_relu(acc + b_ref[...].astype(jnp.float32))


def pose_encoder_kernel(x_ref,
                        w1_ref, b1_ref,
                        w2_ref, b2_ref,
                        w3_ref, b3_ref,
                        w4_ref, b4_ref,
                        o_ref, *, layer1_on_vpu):
    """Fused 4-layer MLP with LeakyReLU(0.1) after each layer.

    x_ref is one (batch_tile, 6) tile; all weights/biases are whole-array
    VMEM-resident. Layers 2-4 run back-to-back on the MXU with the
    elementwise LeakyReLU on the VPU in between; layer 1 optionally runs
    entirely on the VPU (K=6).
    """
    h = x_ref[...].astype(jnp.float32)
    if layer1_on_vpu:
        h = _layer1_vpu(h, w1_ref, b1_ref)
    else:
        h = _layer_mxu(h, w1_ref, b1_ref)
    h = _layer_mxu(h, w2_ref, b2_ref)
    h = _layer_mxu(h, w3_ref, b3_ref)
    h = _layer_mxu(h, w4_ref, b4_ref)
    o_ref[...] = h.astype(o_ref.dtype)


def make_params(key, z_dim=Z_DIM, weight_dtype=jnp.float32):
    """Deterministic synthetic parameters (Kaiming-ish scaling).

    Weights are (in_features, out_features) -- transpose of torch
    Linear.weight -- so the kernel does x @ W directly. Biases are
    (1, out_features), kept f32.
    """
    dims = (IN_DIM,) + HIDDEN + (z_dim,)
    params = []
    for i in range(len(dims) - 1):
        fan_in, fan_out = dims[i], dims[i + 1]
        key, wk, bk = jax.random.split(key, 3)
        scale = jnp.sqrt(2.0 / fan_in)
        w = jax.random.normal(wk, (fan_in, fan_out), dtype=jnp.float32) * scale
        b = jax.random.normal(bk, (1, fan_out), dtype=jnp.float32) * 0.01
        params.append((w.astype(weight_dtype), b))
    return params


@functools.partial(
    jax.jit,
    static_argnames=("batch_tile", "layer1_on_vpu", "return_padded"))
def pose_encoder_forward(current_pose, params, batch_tile=1024,
                         layer1_on_vpu=True, return_padded=False):
    """current_pose: (B, 6) float32  ->  (B, z_dim) float32.

    With return_padded=True the raw (Bp, round_up(z_dim,128)) kernel output is
    returned (no post-kernel depad copy); consumers index [:B, :z_dim].
    """
    B, F = current_pose.shape
    assert F == IN_DIM
    z_dim = params[-1][0].shape[1]

    # ---- balanced batch tiling ----
    # Requested tile, rounded to the f32 sublane and capped so the per-step
    # working set stays comfortably under every generation's scoped VMEM.
    B8 = _round_up(B, _SUBLANE)
    bt_req = min(max(_round_up(batch_tile, _SUBLANE), _SUBLANE), _MAX_BT)
    n_tiles = _cdiv(B8, bt_req)
    # v7x has 2 TensorCores: make sure large batches give both cores a step.
    if B8 >= _SPLIT_MIN_ROWS and n_tiles < 2:
        n_tiles = 2
    # Balanced split: padding waste < 8 rows per tile (vs. pad-to-bt which
    # could waste up to bt-8 rows).
    bt = _round_up(_cdiv(B8, n_tiles), _SUBLANE)
    Bp = bt * n_tiles
    pad_b = Bp - B
    x = jnp.pad(current_pose, ((0, pad_b), (0, 0))) if pad_b else current_pose

    # Lane-dense output: pad the last layer's output dim to a multiple of 128.
    # Padded columns have zero weights/biases -> LeakyReLU(0) = 0, sliced off.
    z_pad = _round_up(z_dim, _LANE)
    w4, b4 = params[-1]
    if z_pad != z_dim:
        w4 = jnp.pad(w4, ((0, 0), (0, z_pad - z_dim)))
        b4 = jnp.pad(b4, ((0, 0), (0, z_pad - z_dim)))
    flat_params = [t for wb in params[:-1] for t in wb] + [w4, b4]

    # Weights/biases are grid-invariant: one whole-array copy resident in VMEM
    # for the whole kernel (no per-step double-buffered DMA). <1 MiB even in
    # f32, so one copy per TensorCore is fine on v7x's 64 MiB VMEM.
    vmem_resident = pl.BlockSpec(memory_space=pltpu.MemorySpace.VMEM)

    kernel = functools.partial(pose_encoder_kernel,
                               layer1_on_vpu=layer1_on_vpu)

    out = pl.pallas_call(
        kernel,
        out_shape=jax.ShapeDtypeStruct((Bp, z_pad), current_pose.dtype),
        grid_spec=pltpu.PrefetchScalarGridSpec(
            num_scalar_prefetch=0,
            grid=(n_tiles,),
            in_specs=[pl.BlockSpec((bt, IN_DIM), lambda i: (i, 0))]
                     + [vmem_resident] * len(flat_params),
            out_specs=pl.BlockSpec((bt, z_pad), lambda i: (i, 0)),
        ),
        compiler_params=pltpu.CompilerParams(
            # Batch axis is fully independent -> shards across v7x's two
            # TensorCores whenever the grid has >= 2 steps.
            dimension_semantics=("parallel",)),
    )(x, *flat_params)

    if return_padded:
        return out
    return out[:B, :z_dim]


def pose_encoder_ref(current_pose, params):
    """Pure-JAX reference matching the kernel's mixed-precision arithmetic."""
    h = current_pose.astype(jnp.float32)
    for w, b in params:
        h = jnp.dot(h.astype(w.dtype), w,
                    preferred_element_type=jnp.float32) + b.astype(jnp.float32)
        h = jnp.where(h > 0, h, LEAK * h)
    return h


if __name__ == "__main__":
    key = jax.random.PRNGKey(0)
    pkey, xkey, x2key = jax.random.split(key, 3)

    # ---- f32 weights, tiny batch: check against the reference ----
    params_f32 = make_params(pkey, z_dim=Z_DIM, weight_dtype=jnp.float32)
    batch = 8
    x_small = jax.random.normal(xkey, (batch, IN_DIM), dtype=jnp.float32)

    out = jax.block_until_ready(pose_encoder_forward(x_small, params_f32))
    ref = pose_encoder_ref(x_small, params_f32)
    assert out.shape == (batch, Z_DIM), out.shape
    assert jnp.allclose(out, ref, atol=1e-4, rtol=1e-4), \
        "f32 mismatch vs reference"

    # ---- bf16 weights, awkward batch: balanced multi-step parallel grid ----
    params_bf16 = [(w.astype(jnp.bfloat16), b) for w, b in params_f32]
    big_batch = 300  # balanced split: 3 tiles of 104 rows (12 padded), not 512
    x_big = jax.random.normal(x2key, (big_batch, IN_DIM), dtype=jnp.float32)

    out_bf16 = jax.block_until_ready(
        pose_encoder_forward(x_big, params_bf16, batch_tile=128))
    ref_bf16 = pose_encoder_ref(x_big, params_bf16)
    assert out_bf16.shape == (big_batch, Z_DIM), out_bf16.shape
    assert jnp.allclose(out_bf16, ref_bf16, atol=1e-2, rtol=1e-2), \
        "bf16 mismatch vs reference"

    # ---- large batch, default tile (>= 2 parallel steps for v7x), padded
    #      output path (no post-kernel depad copy) ----
    x_large = jax.random.normal(x2key, (1536, IN_DIM), dtype=jnp.float32)
    out_pad = jax.block_until_ready(
        pose_encoder_forward(x_large, params_bf16, return_padded=True))
    ref_large = pose_encoder_ref(x_large, params_bf16)
    assert out_pad.shape[1] == 128 and out_pad.shape[0] >= 1536, out_pad.shape
    assert jnp.allclose(out_pad[:1536, :Z_DIM], ref_large,
                        atol=1e-2, rtol=1e-2), "padded-output mismatch"

    print("KERNEL_OK")
</pallas_src>

<mosaic_0001>
module attributes {stable_mosaic.version = 11 : i64} {
  func.func @pose_encoder_kernel(%arg0: i32, %arg1: memref<8x6xf32, #tpu.memory_space<vmem>>, %arg2: memref<6x512xf32, #tpu.memory_space<vmem>>, %arg3: memref<1x512xf32, #tpu.memory_space<vmem>>, %arg4: memref<512x256xf32, #tpu.memory_space<vmem>>, %arg5: memref<1x256xf32, #tpu.memory_space<vmem>>, %arg6: memref<256x128xf32, #tpu.memory_space<vmem>>, %arg7: memref<1x128xf32, #tpu.memory_space<vmem>>, %arg8: memref<128x128xf32, #tpu.memory_space<vmem>>, %arg9: memref<1x128xf32, #tpu.memory_space<vmem>>, %arg10: memref<8x128xf32, #tpu.memory_space<vmem>>) attributes {dimension_semantics = [#tpu.dimension_semantics<parallel>], iteration_bounds = array<i64: 1>, scalar_prefetch = 0 : i64, scratch_operands = 0 : i64, tpu.core_type = #tpu.core_type<tc>, window_params = [{transform_indices = @transform_0, window_bounds = array<i64: 8, 6>}, {pipeline_mode = #tpu.pipeline_mode<synchronous>, transform_indices = @transform_1, window_bounds = array<i64: 6, 512>}, {pipeline_mode = #tpu.pipeline_mode<synchronous>, transform_indices = @transform_2, window_bounds = array<i64: 1, 512>}, {pipeline_mode = #tpu.pipeline_mode<synchronous>, transform_indices = @transform_3, window_bounds = array<i64: 512, 256>}, {pipeline_mode = #tpu.pipeline_mode<synchronous>, transform_indices = @transform_4, window_bounds = array<i64: 1, 256>}, {pipeline_mode = #tpu.pipeline_mode<synchronous>, transform_indices = @transform_5, window_bounds = array<i64: 256, 128>}, {pipeline_mode = #tpu.pipeline_mode<synchronous>, transform_indices = @transform_6, window_bounds = array<i64: 1, 128>}, {pipeline_mode = #tpu.pipeline_mode<synchronous>, transform_indices = @transform_7, window_bounds = array<i64: 128, 128>}, {pipeline_mode = #tpu.pipeline_mode<synchronous>, transform_indices = @transform_8, window_bounds = array<i64: 1, 128>}, {transform_indices = @transform_9, window_bounds = array<i64: 8, 128>}]} {
    %c0 = arith.constant 0 : index
    %c0_0 = arith.constant 0 : index
    %0 = vector.load %arg1[%c0, %c0_0] : memref<8x6xf32, #tpu.memory_space<vmem>>, vector<8x6xf32>
    %c0_1 = arith.constant 0 : index
    %c0_2 = arith.constant 0 : index
    %1 = vector.load %arg2[%c0_1, %c0_2] : memref<6x512xf32, #tpu.memory_space<vmem>>, vector<6x512xf32>
    %2 = vector.extract_strided_slice %0 {offsets = [0, 0], sizes = [8, 1], strides = [1, 1]} : vector<8x6xf32> to vector<8x1xf32>
    %3 = vector.extract_strided_slice %1 {offsets = [0, 0], sizes = [1, 512], strides = [1, 1]} : vector<6x512xf32> to vector<1x512xf32>
    %4 = vector.broadcast %2 : vector<8x1xf32> to vector<8x512xf32>
    %5 = vector.broadcast %3 : vector<1x512xf32> to vector<8x512xf32>
    %6 = arith.mulf %4, %5 : vector<8x512xf32>
    %7 = vector.extract_strided_slice %0 {offsets = [0, 1], sizes = [8, 1], strides = [1, 1]} : vector<8x6xf32> to vector<8x1xf32>
    %8 = vector.extract_strided_slice %1 {offsets = [1, 0], sizes = [1, 512], strides = [1, 1]} : vector<6x512xf32> to vector<1x512xf32>
    %9 = vector.broadcast %7 : vector<8x1xf32> to vector<8x512xf32>
    %10 = vector.broadcast %8 : vector<1x512xf32> to vector<8x512xf32>
    %11 = arith.mulf %9, %10 : vector<8x512xf32>
    %12 = arith.addf %6, %11 : vector<8x512xf32>
    %13 = vector.extract_strided_slice %0 {offsets = [0, 2], sizes = [8, 1], strides = [1, 1]} : vector<8x6xf32> to vector<8x1xf32>
    %14 = vector.extract_strided_slice %1 {offsets = [2, 0], sizes = [1, 512], strides = [1, 1]} : vector<6x512xf32> to vector<1x512xf32>
    %15 = vector.broadcast %13 : vector<8x1xf32> to vector<8x512xf32>
    %16 = vector.broadcast %14 : vector<1x512xf32> to vector<8x512xf32>
    %17 = arith.mulf %15, %16 : vector<8x512xf32>
    %18 = arith.addf %12, %17 : vector<8x512xf32>
    %19 = vector.extract_strided_slice %0 {offsets = [0, 3], sizes = [8, 1], strides = [1, 1]} : vector<8x6xf32> to vector<8x1xf32>
    %20 = vector.extract_strided_slice %1 {offsets = [3, 0], sizes = [1, 512], strides = [1, 1]} : vector<6x512xf32> to vector<1x512xf32>
    %21 = vector.broadcast %19 : vector<8x1xf32> to vector<8x512xf32>
    %22 = vector.broadcast %20 : vector<1x512xf32> to vector<8x512xf32>
    %23 = arith.mulf %21, %22 : vector<8x512xf32>
    %24 = arith.addf %18, %23 : vector<8x512xf32>
    %25 = vector.extract_strided_slice %0 {offsets = [0, 4], sizes = [8, 1], strides = [1, 1]} : vector<8x6xf32> to vector<8x1xf32>
    %26 = vector.extract_strided_slice %1 {offsets = [4, 0], sizes = [1, 512], strides = [1, 1]} : vector<6x512xf32> to vector<1x512xf32>
    %27 = vector.broadcast %25 : vector<8x1xf32> to vector<8x512xf32>
    %28 = vector.broadcast %26 : vector<1x512xf32> to vector<8x512xf32>
    %29 = arith.mulf %27, %28 : vector<8x512xf32>
    %30 = arith.addf %24, %29 : vector<8x512xf32>
    %31 = vector.extract_strided_slice %0 {offsets = [0, 5], sizes = [8, 1], strides = [1, 1]} : vector<8x6xf32> to vector<8x1xf32>
    %32 = vector.extract_strided_slice %1 {offsets = [5, 0], sizes = [1, 512], strides = [1, 1]} : vector<6x512xf32> to vector<1x512xf32>
    %33 = vector.broadcast %31 : vector<8x1xf32> to vector<8x512xf32>
    %34 = vector.broadcast %32 : vector<1x512xf32> to vector<8x512xf32>
    %35 = arith.mulf %33, %34 : vector<8x512xf32>
    %36 = arith.addf %30, %35 : vector<8x512xf32>
    %c0_3 = arith.constant 0 : index
    %c0_4 = arith.constant 0 : index
    %37 = vector.load %arg3[%c0_3, %c0_4] : memref<1x512xf32, #tpu.memory_space<vmem>>, vector<1x512xf32>
    %38 = vector.broadcast %37 : vector<1x512xf32> to vector<8x512xf32>
    %39 = arith.addf %36, %38 : vector<8x512xf32>
    %cst = arith.constant 0.000000e+00 : f32
    %40 = vector.broadcast %cst : f32 to vector<8x512xf32>
    %41 = arith.cmpf ogt, %39, %40 : vector<8x512xf32>
    %cst_5 = arith.constant 1.000000e-01 : f32
    %42 = vector.broadcast %cst_5 : f32 to vector<8x512xf32>
    %43 = arith.mulf %42, %39 : vector<8x512xf32>
    %44 = arith.select %41, %39, %43 : vector<8x512xi1>, vector<8x512xf32>
    %c0_6 = arith.constant 0 : index
    %c0_7 = arith.constant 0 : index
    %45 = vector.load %arg4[%c0_6, %c0_7] : memref<512x256xf32, #tpu.memory_space<vmem>>, vector<512x256xf32>
    %cst_8 = arith.constant dense<0.000000e+00> : vector<8x256xf32>
    %46 = tpu.matmul %44, %45, %cst_8 {dimension_numbers = #tpu.dot_dimension_numbers<[1], [0], [0], [1], [0, 0, 1, 1], [], []>} : vector<8x512xf32>, vector<512x256xf32>, vector<8x256xf32> -> vector<8x256xf32>
    %c0_9 = arith.constant 0 : index
    %c0_10 = arith.constant 0 : index
    %47 = vector.load %arg5[%c0_9, %c0_10] : memref<1x256xf32, #tpu.memory_space<vmem>>, vector<1x256xf32>
    %48 = vector.broadcast %47 : vector<1x256xf32> to vector<8x256xf32>
    %49 = arith.addf %46, %48 : vector<8x256xf32>
    %cst_11 = arith.constant 0.000000e+00 : f32
    %50 = vector.broadcast %cst_11 : f32 to vector<8x256xf32>
    %51 = arith.cmpf ogt, %49, %50 : vector<8x256xf32>
    %cst_12 = arith.constant 1.000000e-01 : f32
    %52 = vector.broadcast %cst_12 : f32 to vector<8x256xf32>
    %53 = arith.mulf %52, %49 : vector<8x256xf32>
    %54 = arith.select %51, %49, %53 : vector<8x256xi1>, vector<8x256xf32>
    %c0_13 = arith.constant 0 : index
    %c0_14 = arith.constant 0 : index
    %55 = vector.load %arg6[%c0_13, %c0_14] : memref<256x128xf32, #tpu.memory_space<vmem>>, vector<256x128xf32>
    %cst_15 = arith.constant dense<0.000000e+00> : vector<8x128xf32>
    %56 = tpu.matmul %54, %55, %cst_15 {dimension_numbers = #tpu.dot_dimension_numbers<[1], [0], [0], [1], [0, 0, 1, 1], [], []>} : vector<8x256xf32>, vector<256x128xf32>, vector<8x128xf32> -> vector<8x128xf32>
    %c0_16 = arith.constant 0 : index
    %c0_17 = arith.constant 0 : index
    %57 = vector.load %arg7[%c0_16, %c0_17] : memref<1x128xf32, #tpu.memory_space<vmem>>, vector<1x128xf32>
    %58 = vector.broadcast %57 : vector<1x128xf32> to vector<8x128xf32>
    %59 = arith.addf %56, %58 : vector<8x128xf32>
    %cst_18 = arith.constant 0.000000e+00 : f32
    %60 = vector.broadcast %cst_18 : f32 to vector<8x128xf32>
    %61 = arith.cmpf ogt, %59, %60 : vector<8x128xf32>
    %cst_19 = arith.constant 1.000000e-01 : f32
    %62 = vector.broadcast %cst_19 : f32 to vector<8x128xf32>
    %63 = arith.mulf %62, %59 : vector<8x128xf32>
    %64 = arith.select %61, %59, %63 : vector<8x128xi1>, vector<8x128xf32>
    %c0_20 = arith.constant 0 : index
    %c0_21 = arith.constant 0 : index
    %65 = vector.load %arg8[%c0_20, %c0_21] : memref<128x128xf32, #tpu.memory_space<vmem>>, vector<128x128xf32>
    %cst_22 = arith.constant dense<0.000000e+00> : vector<8x128xf32>
    %66 = tpu.matmul %64, %65, %cst_22 {dimension_numbers = #tpu.dot_dimension_numbers<[1], [0], [0], [1], [0, 0, 1, 1], [], []>} : vector<8x128xf32>, vector<128x128xf32>, vector<8x128xf32> -> vector<8x128xf32>
    %c0_23 = arith.constant 0 : index
    %c0_24 = arith.constant 0 : index
    %67 = vector.load %arg9[%c0_23, %c0_24] : memref<1x128xf32, #tpu.memory_space<vmem>>, vector<1x128xf32>
    %68 = vector.broadcast %67 : vector<1x128xf32> to vector<8x128xf32>
    %69 = arith.addf %66, %68 : vector<8x128xf32>
    %cst_25 = arith.constant 0.000000e+00 : f32
    %70 = vector.broadcast %cst_25 : f32 to vector<8x128xf32>
    %71 = arith.cmpf ogt, %69, %70 : vector<8x128xf32>
    %cst_26 = arith.constant 1.000000e-01 : f32
    %72 = vector.broadcast %cst_26 : f32 to vector<8x128xf32>
    %73 = arith.mulf %72, %69 : vector<8x128xf32>
    %74 = arith.select %71, %69, %73 : vector<8x128xi1>, vector<8x128xf32>
    %c0_27 = arith.constant 0 : index
    %c0_28 = arith.constant 0 : index
    %75 = vector.load %arg10[%c0_27, %c0_28] : memref<8x128xf32, #tpu.memory_space<vmem>>, vector<8x128xf32>
    tpu.vector_store %arg10[%c0_27, %c0_28], %74 {strides = array<i32>} : memref<8x128xf32, #tpu.memory_space<vmem>>, vector<8x128xf32>,
    return
  }
  func.func @transform_0(%arg0: i32) -> (i32, i32) {
    %c0_i32 = arith.constant 0 : i32
    %c0_i32_0 = arith.constant 0 : i32
    return %arg0, %c0_i32 : i32, i32
  }
  func.func @transform_1(%arg0: i32) -> (i32, i32) {
    %c0_i32 = arith.constant 0 : i32
    %c0_i32_0 = arith.constant 0 : i32
    %c0_i32_1 = arith.constant 0 : i32
    return %c0_i32, %c0_i32_0 : i32, i32
  }
  func.func @transform_2(%arg0: i32) -> (i32, i32) {
    %c0_i32 = arith.constant 0 : i32
    %c0_i32_0 = arith.constant 0 : i32
    %c0_i32_1 = arith.constant 0 : i32
    return %c0_i32, %c0_i32_0 : i32, i32
  }
  func.func @transform_3(%arg0: i32) -> (i32, i32) {
    %c0_i32 = arith.constant 0 : i32
    %c0_i32_0 = arith.constant 0 : i32
    %c0_i32_1 = arith.constant 0 : i32
    return %c0_i32, %c0_i32_0 : i32, i32
  }
  func.func @transform_4(%arg0: i32) -> (i32, i32) {
    %c0_i32 = arith.constant 0 : i32
    %c0_i32_0 = arith.constant 0 : i32
    %c0_i32_1 = arith.constant 0 : i32
    return %c0_i32, %c0_i32_0 : i32, i32
  }
  func.func @transform_5(%arg0: i32) -> (i32, i32) {
    %c0_i32 = arith.constant 0 : i32
    %c0_i32_0 = arith.constant 0 : i32
    %c0_i32_1 = arith.constant 0 : i32
    return %c0_i32, %c0_i32_0 : i32, i32
  }
  func.func @transform_6(%arg0: i32) -> (i32, i32) {
    %c0_i32 = arith.constant 0 : i32
    %c0_i32_0 = arith.constant 0 : i32
    %c0_i32_1 = arith.constant 0 : i32
    return %c0_i32, %c0_i32_0 : i32, i32
  }
  func.func @transform_7(%arg0: i32) -> (i32, i32) {
    %c0_i32 = arith.constant 0 : i32
    %c0_i32_0 = arith.constant 0 : i32
    %c0_i32_1 = arith.constant 0 : i32
    return %c0_i32, %c0_i32_0 : i32, i32
  }
  func.func @transform_8(%arg0: i32) -> (i32, i32) {
    %c0_i32 = arith.constant 0 : i32
    %c0_i32_0 = arith.constant 0 : i32
    %c0_i32_1 = arith.constant 0 : i32
    return %c0_i32, %c0_i32_0 : i32, i32
  }
  func.func @transform_9(%arg0: i32) -> (i32, i32) {
    %c0_i32 = arith.constant 0 : i32
    %c0_i32_0 = arith.constant 0 : i32
    return %arg0, %c0_i32 : i32, i32
  }
}

</mosaic_0001>

<bundles_post_ra>
// kernel: pose_encoder_forward.1
= control target key start
LH: loop header
LB: loop body
LE: loop exit
PB: predicated region body
PF: predicated region fallthrough
CT: control target
= control target key end

     0   :  { %14 = vsyncpa [#allocation3], 0  ;;  %s1465_s0 = inlined_call_operand.vmem [shape: f32[8,6], index: 0, kind: input, shape index: {}]   ;;  %s1466_s1 = inlined_call_operand.vmem [shape: f32[6,512], index: 1, kind: input, shape index: {}]   ;;  %s1467_s2 = inlined_call_operand.vmem [shape: f32[1,512], index: 2, kind: input, shape index: {}]   ;;  %s1468_s3 = inlined_call_operand.hbm [shape: f32[512,256], index: 3, kind: input, shape index: {}]   ;;  %s1469_s4 = inlined_call_operand.vmem [shape: f32[1,256], index: 4, kind: input, shape index: {}]   ;;  %s1470_s5 = inlined_call_operand.vmem [shape: f32[256,128], index: 5, kind: input, shape index: {}]   ;;  %s1471_s6 = inlined_call_operand.vmem [shape: f32[1,128], index: 6, kind: input, shape index: {}]   ;;  %s1472_s7 = inlined_call_operand.vmem [shape: f32[128,128], index: 7, kind: input, shape index: {}]   ;;  %s1473_s8 = inlined_call_operand.vmem [shape: f32[1,128], index: 8, kind: input, shape index: {}]   ;;  %s1474_s9 = inlined_call_operand.hbm [shape: f32[8,128], index: 9, kind: output, shape index: {}]  }
   0x1   :  { %15 = vsyncpa [#allocation4], 0  ;;  %s1111_s30 = smov [#allocation2]   ;;  %s1063_s13 = scalar_lea.hbm %s1468_s3, 16384 }
   0x2   :  { %s27_s10 = sshll.u32 %s1111_s30, 4  ;;  %p1064_p0 = scmp.ne.s32.totalorder %s1468_s3, %s1063_s13  ;;  %s28_s10 = int_to_ptr.vmem [resolvable:$true] %s27_s10 }
   0x3   :  { %p1067_p1 = scmp.lt.u32.totalorder %s1063_s13, %s1468_s3 }
   0x5   :  { %p1069_p2 = pnand %p1067_p1, %p1064_p0 }
   0x7   :  { %1072 = shalt.err (!%p1069_p2)
}
   0x8   :  { %s1073_s18 = scalar_lea.vmem %s28_s10, 16384  ;;  %p1078_p4 = scmp.lt.s32.totalorder %s28_s10, %s28_s10 }
   0x9   :  { %p1074_p3 = scmp.ne.s32.totalorder %s28_s10, %s1073_s18  ;;  %p1079_p5 = scmp.lt.s32.totalorder %s1073_s18, %s1073_s18 }
   0xb   :  { %p1080_p6 = por %p1079_p5, %p1078_p4 }
   0xd   :  { %p1081_p7 = pnand %p1080_p6, %p1074_p3 }
   0xf   :  { %1084 = shalt.err (!%p1081_p7)
}
  0x10   :  { %s1112_s19 = smov 256   ;;  %s1113_s20 = smov 16  }
  0x11   :  { %33 = dma.hbm_to_vmem [thread:$0]  %s1468_s3, 16384, %s28_s10, [#allocation3], %s1112_s19, %s1112_s19, %s1113_s20  }
  0x12   :  { %1107 = dma.done.wait [#allocation3], 16384  }
  0x13   :  { %1108 = vsyncadd [#allocation3], 4294950912  ;;  %v1114_v0 = vmov 0   ;;  %v1115_v1 = vmov 2   ;;  %v47_v2 = vld [vmem:[%s1465_s0] sm:$0xff]  ;;  %v256_v3 = vld [vmem:[#allocation2 + $0x8] sm:$0xff]  ;;  %v57_v36 = vlaneseq }
  0x14   :  { %1057 = vset.pattern.permute.xlu0 %v1114_v0  ;;  %1059 = vset.pattern.permute.xlu1 %v1115_v1  ;;  %v258_v4 = vld [vmem:[#allocation2 + $0x18] sm:$0xff]  ;;  %v255_v6 = vld [vmem:[#allocation2] sm:$0xff]  ;;  %v257_v7 = vld [vmem:[#allocation2 + $0x10] sm:$0xff]  ;;  %v1116_v17 = vmov 1   ;;  %v1117_v18 = vmov 3   ;;  %v1118_v28 = vmov 4  }
  0x15   :  { %54 = vperm.xlu0 %1057, %v47_v2   ;;  %106 = vperm.xlu1 %1059, %v47_v2   ;;  %v856_v5 = vpack.c.bf16 %v258_v4, %v256_v3  ;;  %v260_v8 = vld [vmem:[#allocation2 + $0x28] sm:$0xff]  ;;  %v858_v9 = vpack.c.bf16 %v257_v7, %v255_v6  ;;  %v262_v10 = vld [vmem:[#allocation2 + $0x38] sm:$0xff]  ;;  %v259_v11 = vld [vmem:[#allocation2 + $0x20] sm:$0xff]  ;;  %v1119_v29 = vmov 5   ;;  %v1189_v43 = vshrl.u32 %v57_v36, 7 }
  0x16   :  { %v261_v12 = vld [vmem:[#allocation2 + $0x30] sm:$0xff]  ;;  %v860_v13 = vpack.c.bf16 %v262_v10, %v260_v8  ;;  %v264_v14 = vld [vmem:[#allocation2 + $0x48] sm:$0xff]  ;;  %v266_v15 = vld [vmem:[#allocation2 + $0x58] sm:$0xff]  ;;  %vm1121_vm6 = vmmov 0  }
  0x17   :  { %857 = vmatprep.subr.bf16.mxu0 %v856_v5  ;;  %v862_v16 = vpack.c.bf16 %v261_v12, %v259_v11  ;;  %v864_v19 = vpack.c.bf16 %v266_v15, %v264_v14  ;;  %v263_v20 = vld [vmem:[#allocation2 + $0x40] sm:$0xff]  ;;  %v265_v21 = vld [vmem:[#allocation2 + $0x50] sm:$0xff]  ;;  %v268_v22 = vld [vmem:[#allocation2 + $0x68] sm:$0xff]  ;;  %v1197_v51 = vsub.s32 2, %v1189_v43 }
  0x18   :  { %859 = vmatpush1.bf16.msra.mxu0 %v858_v9  ;;  %v270_v23 = vld [vmem:[#allocation2 + $0x78] sm:$0xff]  ;;  %v866_v24 = vpack.c.bf16 %v265_v21, %v263_v20  ;;  %v267_v26 = vld [vmem:[#allocation2 + $0x60] sm:$0xff]  ;;  %v269_v27 = vld [vmem:[#allocation2 + $0x70] sm:$0xff] }
  0x19   :  { %1058 = vset.pattern.permute.xlu0 %v1116_v17  ;;  %1060 = vset.pattern.permute.xlu1 %v1117_v18  ;;  %v868_v25 = vpack.c.bf16 %v270_v23, %v268_v22  ;;  %v272_v30 = vld [vmem:[#allocation2 + $0x88] sm:$0xff]  ;;  %v274_v31 = vld [vmem:[#allocation2 + $0x98] sm:$0xff]  ;;  %v870_v32 = vpack.c.bf16 %v269_v27, %v267_v26  ;;  %v271_v34 = vld [vmem:[#allocation2 + $0x80] sm:$0xff] }
  0x1a   :  { %78 = vperm.xlu0 %1058, %v47_v2   ;;  %134 = vperm.xlu1 %1060, %v47_v2   ;;  %v872_v33 = vpack.c.bf16 %v274_v31, %v272_v30  ;;  %v273_v35 = vld [vmem:[#allocation2 + $0x90] sm:$0xff]  ;;  %v276_v37 = vld [vmem:[#allocation2 + $0xa8] sm:$0xff]  ;;  %v278_v38 = vld [vmem:[#allocation2 + $0xb8] sm:$0xff] }
  0x1b   :  { %861 = vmatprep.subr.bf16.mxu0 %v860_v13  ;;  %v874_v39 = vpack.c.bf16 %v273_v35, %v271_v34  ;;  %v876_v40 = vpack.c.bf16 %v278_v38, %v276_v37  ;;  %v275_v41 = vld [vmem:[#allocation2 + $0xa0] sm:$0xff]  ;;  %v277_v42 = vld [vmem:[#allocation2 + $0xb0] sm:$0xff]  ;;  %v280_v44 = vld [vmem:[#allocation2 + $0xc8] sm:$0xff] }
  0x1c   :  { %863 = vmatpush1.bf16.msra.mxu0 %v862_v16  ;;  %v282_v45 = vld [vmem:[#allocation2 + $0xd8] sm:$0xff]  ;;  %v878_v46 = vpack.c.bf16 %v277_v42, %v275_v41  ;;  %v1194_v47 = vld [vmem:[%s1467_s2] sm:$0xf]  ;;  %v281_v50 = vld [vmem:[#allocation2 + $0xd0] sm:$0xff] }
  0x1d   :  { %865 = vmatprep.subr.bf16.mxu0 %v864_v19  ;;  %v880_v48 = vpack.c.bf16 %v282_v45, %v280_v44  ;;  %v279_v49 = vld [vmem:[#allocation2 + $0xc0] sm:$0xff]  ;;  %v284_v52 = vld [vmem:[#allocation2 + $0xe8] sm:$0xff]  ;;  %v286_v53 = vld [vmem:[#allocation2 + $0xf8] sm:$0xff]  ;;  %v230_v54 = vrot.slane %v1194_v47, %v1197_v51 }
  0x1e   :  { %1061 = vset.pattern.permute.xlu1 %v1118_v28  ;;  %1062 = vset.pattern.permute.xlu0 %v1119_v29  ;;  %v882_v55 = vpack.c.bf16 %v281_v50, %v279_v49  ;;  %v884_v56 = vpack.c.bf16 %v286_v53, %v284_v52  ;;  %v283_v57 = vld [vmem:[#allocation2 + $0xe0] sm:$0xff]  ;;  %v285_v58 = vld [vmem:[#allocation2 + $0xf0] sm:$0xff]  ;;  %v288_v59 = vld [vmem:[#allocation2 + $0x108] sm:$0xff] }
  0x1f   :  { %162 = vperm.xlu1 %1061, %v47_v2   ;;  %190 = vperm.xlu0 %1062, %v47_v2   ;;  %v290_v60 = vld [vmem:[#allocation2 + $0x118] sm:$0xff]  ;;  %v886_v61 = vpack.c.bf16 %v285_v58, %v283_v57  ;;  %v287_v63 = vld [vmem:[#allocation2 + $0x100] sm:$0xff]  ;;  %v289_v0 = vld [vmem:[#allocation2 + $0x110] sm:$0xff] }
  0x20   :  { %867 = vmatpush1.bf16.msra.mxu0 %v866_v24  ;;  %v888_v62 = vpack.c.bf16 %v290_v60, %v288_v59  ;;  %v292_v1 = vld [vmem:[#allocation2 + $0x128] sm:$0xff]  ;;  %v294_v2 = vld [vmem:[#allocation2 + $0x138] sm:$0xff]  ;;  %v890_v3 = vpack.c.bf16 %v289_v0, %v287_v63  ;;  %v291_v5 = vld [vmem:[#allocation2 + $0x120] sm:$0xff] }
  0x21   :  { %869 = vmatprep.subr.bf16.mxu0 %v868_v25  ;;  %v892_v4 = vpack.c.bf16 %v294_v2, %v292_v1  ;;  %v293_v6 = vld [vmem:[#allocation2 + $0x130] sm:$0xff]  ;;  %v296_v7 = vld [vmem:[#allocation2 + $0x148] sm:$0xff]  ;;  %v298_v8 = vld [vmem:[#allocation2 + $0x158] sm:$0xff] }
  0x22   :  { %v894_v9 = vpack.c.bf16 %v293_v6, %v291_v5  ;;  %v896_v10 = vpack.c.bf16 %v298_v8, %v296_v7  ;;  %v295_v11 = vld [vmem:[#allocation2 + $0x140] sm:$0xff]  ;;  %v297_v12 = vld [vmem:[#allocation2 + $0x150] sm:$0xff]  ;;  %v300_v13 = vld [vmem:[#allocation2 + $0x168] sm:$0xff] }
  0x23   :  { %v302_v14 = vld [vmem:[#allocation2 + $0x178] sm:$0xff]  ;;  %v898_v15 = vpack.c.bf16 %v297_v12, %v295_v11  ;;  %v299_v17 = vld [vmem:[#allocation2 + $0x160] sm:$0xff]  ;;  %v301_v18 = vld [vmem:[#allocation2 + $0x170] sm:$0xff] }
  0x24   :  { %871 = vmatpush1.bf16.msra.mxu0 %v870_v32  ;;  %v900_v16 = vpack.c.bf16 %v302_v14, %v300_v13  ;;  %v304_v19 = vld [vmem:[#allocation2 + $0x188] sm:$0xff]  ;;  %v306_v20 = vld [vmem:[#allocation2 + $0x198] sm:$0xff]  ;;  %v902_v21 = vpack.c.bf16 %v301_v18, %v299_v17  ;;  %v303_v23 = vld [vmem:[#allocation2 + $0x180] sm:$0xff] }
  0x25   :  { %873 = vmatprep.subr.bf16.mxu0 %v872_v33  ;;  %v904_v22 = vpack.c.bf16 %v306_v20, %v304_v19  ;;  %v305_v24 = vld [vmem:[#allocation2 + $0x190] sm:$0xff]  ;;  %v308_v25 = vld [vmem:[#allocation2 + $0x1a8] sm:$0xff]  ;;  %v310_v26 = vld [vmem:[#allocation2 + $0x1b8] sm:$0xff] }
  0x26   :  { %v906_v27 = vpack.c.bf16 %v305_v24, %v303_v23  ;;  %v908_v28 = vpack.c.bf16 %v310_v26, %v308_v25  ;;  %v307_v29 = vld [vmem:[#allocation2 + $0x1a0] sm:$0xff]  ;;  %v309_v30 = vld [vmem:[#allocation2 + $0x1b0] sm:$0xff]  ;;  %v312_v31 = vld [vmem:[#allocation2 + $0x1c8] sm:$0xff]  ;;  %v1274_v23 = vsub.s32 0, %v1189_v43 }
  0x27   :  { %v314_v32 = vld [vmem:[#allocation2 + $0x1d8] sm:$0xff]  ;;  %v910_v33 = vpack.c.bf16 %v309_v30, %v307_v29  ;;  %v311_v35 = vld [vmem:[#allocation2 + $0x1c0] sm:$0xff]  ;;  %v313_v36 = vld [vmem:[#allocation2 + $0x1d0] sm:$0xff]  ;;  %v1300_v29 = vsub.s32 3, %v1189_v43  ;;  %v1303_v30 = vsub.s32 4, %v1189_v43 }
  0x28   :  { %875 = vmatpush1.bf16.msra.mxu0 %v874_v39  ;;  %v912_v34 = vpack.c.bf16 %v314_v32, %v312_v31  ;;  %v316_v37 = vld [vmem:[#allocation2 + $0x1e8] sm:$0xff]  ;;  %v318_v38 = vld [vmem:[#allocation2 + $0x1f8] sm:$0xff]  ;;  %v914_v39 = vpack.c.bf16 %v313_v36, %v311_v35  ;;  %v315_v41 = vld [vmem:[#allocation2 + $0x1e0] sm:$0xff] }
  0x29   :  { %877 = vmatprep.subr.bf16.mxu0 %v876_v40  ;;  %v916_v40 = vpack.c.bf16 %v318_v38, %v316_v37  ;;  %v317_v42 = vld [vmem:[#allocation2 + $0x1f0] sm:$0xff]  ;;  %v320_v44 = vld [vmem:[#allocation2 + $0x208] sm:$0xff]  ;;  %v322_v45 = vld [vmem:[#allocation2 + $0x218] sm:$0xff] }
  0x2a   :  { %v559_v49 = vld [vmem:[%s1470_s5 + $0x80] sm:$0xff]  ;;  %v560_v50 = vld [vmem:[%s1470_s5 + $0x88] sm:$0xff]  ;;  %v562_v57 = vld [vmem:[%s1470_s5 + $0x98] sm:$0xff] }
  0x2b   :  { %v543_v52 = vld [vmem:[%s1470_s5] sm:$0xff]  ;;  %v984_v53 = vpack.c.bf16 %v560_v50, %v559_v49  ;;  %v545_v60 = vld [vmem:[%s1470_s5 + $0x10] sm:$0xff]  ;;  %v564_v63 = vld [vmem:[%s1470_s5 + $0xa8] sm:$0xff] }
  0x2c   :  { %879 = vmatpush1.bf16.msra.mxu0 %v878_v46  ;;  %v918_v46 = vpack.c.bf16 %v317_v42, %v315_v41  ;;  %v547_v2 = vld [vmem:[%s1470_s5 + $0x20] sm:$0xff]  ;;  %v566_v5 = vld [vmem:[%s1470_s5 + $0xb8] sm:$0xff]  ;;  %v549_v8 = vld [vmem:[%s1470_s5 + $0x30] sm:$0xff] }
  0x2d   :  { %881 = vmatprep.subr.bf16.mxu0 %v880_v48  ;;  %v920_v48 = vpack.c.bf16 %v322_v45, %v320_v44  ;;  %985 = vmatprep.subr.bf16.mxu1 %v984_v53  ;;  %v568_v11 = vld [vmem:[%s1470_s5 + $0xc8] sm:$0xff]  ;;  %v551_v14 = vld [vmem:[%s1470_s5 + $0x40] sm:$0xff]  ;;  %v570_v17 = vld [vmem:[%s1470_s5 + $0xd8] sm:$0xff] }
  0x2e   :  { %v553_v20 = vld [vmem:[%s1470_s5 + $0x50] sm:$0xff]  ;;  %v1279_v24 = vld [vmem:[%s1466_s1] sm:$0x3f]  ;;  %v1284_v25 = vld [vmem:[%s1466_s1 + $0x8] sm:$0x3f] }
  0x2f   :  { %v1289_v26 = vld [vmem:[%s1466_s1 + $0x10] sm:$0x3f]  ;;  %v60_v31 = vrot.slane %v1279_v24, %v1274_v23  ;;  %v64_v32 = vrot.slane %v1284_v25, %v1274_v23  ;;  %v112_v37 = vrot.slane %v1279_v24, %v1197_v51  ;;  %v116_v38 = vrot.slane %v1284_v25, %v1197_v51 }
  0x30   :  { %883 = vmatpush1.bf16.msra.mxu0 %v882_v55  ;;  %v544_v55 = vld [vmem:[%s1470_s5 + $0x8] sm:$0xff]  ;;  %v68_v35 = vrot.slane %v1289_v26, %v1274_v23  ;;  %v148_v49 = vrot.slane %v1289_v26, %v1300_v29  ;;  %v168_v53 = vrot.slane %v1279_v24, %v1303_v30 }
  0x31   :  { %885 = vmatprep.subr.bf16.mxu0 %v884_v56  ;;  %v561_v56 = vld [vmem:[%s1470_s5 + $0x90] sm:$0xff]  ;;  %v986_v58 = vpack.c.bf16 %v544_v55, %v543_v52  ;;  %v172_v55 = vrot.slane %v1284_v25, %v1303_v30 }
  0x32   :  { %v988_v59 = vpack.c.bf16 %v562_v57, %v561_v56  ;;  %v176_v56 = vrot.slane %v1289_v26, %v1303_v30 }
  0x33   :  { %987 = vmatpush3.bf16.msra.mxu1 %v986_v58 }
  0x34   :  { %887 = vmatpush1.bf16.msra.mxu0 %v886_v61  ;;  %v546_v61 = vld [vmem:[%s1470_s5 + $0x18] sm:$0xff]  ;;  %989 = vmatprep.subr.bf16.mxu1 %v988_v59 }
  0x35   :  { %889 = vmatprep.subr.bf16.mxu0 %v888_v62  ;;  %v563_v62 = vld [vmem:[%s1470_s5 + $0xa0] sm:$0xff]  ;;  %v990_v0 = vpack.c.bf16 %v546_v61, %v545_v60 }
  0x36   :  { %v992_v1 = vpack.c.bf16 %v564_v63, %v563_v62  ;;  %v222_v63 = vrot.slane %v1194_v47, %v1274_v23 }
  0x37   :  { %991 = vmatpush3.bf16.msra.mxu1 %v990_v0 }
  0x38   :  { %891 = vmatpush1.bf16.msra.mxu0 %v890_v3  ;;  %v548_v3 = vld [vmem:[%s1470_s5 + $0x28] sm:$0xff]  ;;  %993 = vmatprep.subr.bf16.mxu1 %v992_v1 }
  0x39   :  { %893 = vmatprep.subr.bf16.mxu0 %v892_v4  ;;  %v565_v4 = vld [vmem:[%s1470_s5 + $0xb0] sm:$0xff]  ;;  %v994_v6 = vpack.c.bf16 %v548_v3, %v547_v2 }
  0x3a   :  { %v996_v7 = vpack.c.bf16 %v566_v5, %v565_v4 }
  0x3b   :  { %995 = vmatpush3.bf16.msra.mxu1 %v994_v6 }
  0x3c   :  { %895 = vmatpush1.bf16.msra.mxu0 %v894_v9  ;;  %v550_v9 = vld [vmem:[%s1470_s5 + $0x38] sm:$0xff]  ;;  %997 = vmatprep.subr.bf16.mxu1 %v996_v7 }
  0x3d   :  { %897 = vmatprep.subr.bf16.mxu0 %v896_v10  ;;  %v567_v10 = vld [vmem:[%s1470_s5 + $0xc0] sm:$0xff]  ;;  %v998_v12 = vpack.c.bf16 %v550_v9, %v549_v8 }
  0x3e   :  { %v1000_v13 = vpack.c.bf16 %v568_v11, %v567_v10 }
  0x3f   :  { %999 = vmatpush3.bf16.msra.mxu1 %v998_v12 }
  0x40   :  { %899 = vmatpush1.bf16.msra.mxu0 %v898_v15  ;;  %v552_v15 = vld [vmem:[%s1470_s5 + $0x48] sm:$0xff]  ;;  %1001 = vmatprep.subr.bf16.mxu1 %v1000_v13 }
  0x41   :  { %901 = vmatprep.subr.bf16.mxu0 %v900_v16  ;;  %v569_v16 = vld [vmem:[%s1470_s5 + $0xd0] sm:$0xff]  ;;  %v1002_v18 = vpack.c.bf16 %v552_v15, %v551_v14 }
  0x42   :  { %v1004_v19 = vpack.c.bf16 %v570_v17, %v569_v16 }
  0x43   :  { %1003 = vmatpush3.bf16.msra.mxu1 %v1002_v18 }
  0x44   :  { %903 = vmatpush1.bf16.msra.mxu0 %v902_v21  ;;  %v554_v21 = vld [vmem:[%s1470_s5 + $0x58] sm:$0xff]  ;;  %1005 = vmatprep.subr.bf16.mxu1 %v1004_v19 }
  0x45   :  { %905 = vmatprep.subr.bf16.mxu0 %v904_v22  ;;  %v1006_v22 = vpack.c.bf16 %v554_v21, %v553_v20  ;;  %v234_v21 = vrot.slane %v1194_v47, %v1300_v29 }
  0x47   :  { %1007 = vmatpush3.bf16.msra.mxu1 %v1006_v22 }
  0x48   :  { %907 = vmatpush1.bf16.msra.mxu0 %v906_v27  ;;  %v1294_v27 = vld [vmem:[%s1466_s1 + $0x18] sm:$0x3f] }
  0x49   :  { %909 = vmatprep.subr.bf16.mxu0 %v908_v28  ;;  %v1297_v28 = vsub.s32 1, %v1189_v43  ;;  %v72_v36 = vrot.slane %v1294_v27, %v1274_v23  ;;  %v152_v52 = vrot.slane %v1294_v27, %v1300_v29  ;;  %v180_v57 = vrot.slane %v1294_v27, %v1303_v30 }
  0x4b   :  { %v88_v42 = vrot.slane %v1284_v25, %v1297_v28  ;;  %v92_v44 = vrot.slane %v1289_v26, %v1297_v28  ;;  %v96_v45 = vrot.slane %v1294_v27, %v1297_v28  ;;  %v226_v62 = vrot.slane %v1194_v47, %v1297_v28  ;;  %v323_v47 = vld [vmem:[#allocation2 + $0x220] sm:$0xff] }
  0x4c   :  { %911 = vmatpush1.bf16.msra.mxu0 %v910_v33  ;;  %v120_v33 = vrot.slane %v1289_v26, %v1197_v51 }
  0x4d   :  { %913 = vmatprep.subr.bf16.mxu0 %v912_v34  ;;  %v1312_v34 = vsub.s32 5, %v1189_v43  ;;  %v84_v43 = vrot.slane %v1279_v24, %v1297_v28 }
  0x4f   :  { %v196_v58 = vrot.slane %v1279_v24, %v1312_v34  ;;  %v200_v59 = vrot.slane %v1284_v25, %v1312_v34  ;;  %v204_v60 = vrot.slane %v1289_v26, %v1312_v34  ;;  %v208_v61 = vrot.slane %v1294_v27, %v1312_v34 }
  0x50   :  { %915 = vmatpush1.bf16.msra.mxu0 %v914_v39 }
  0x51   :  { %917 = vmatprep.subr.bf16.mxu0 %v916_v40  ;;  %v124_v40 = vrot.slane %v1294_v27, %v1197_v51  ;;  %v325_v51 = vld [vmem:[#allocation2 + $0x230] sm:$0xff] }
  0x54   :  { %919 = vmatpush1.bf16.msra.mxu0 %v918_v46  ;;  %v140_v46 = vrot.slane %v1279_v24, %v1300_v29 }
  0x55   :  { %921 = vmatprep.subr.bf16.mxu0 %v920_v48  ;;  %v144_v48 = vrot.slane %v1284_v25, %v1300_v29 }
  0x94   :  { %v55_v39 = vpop.permute.xlu0 %54  ;;  %v107_v41 = vpop.permute.xlu1 %106 }
  0x95   :  { %v127_v50 = vmul.f32 %v120_v33, %v107_v41  ;;  %v73_v0 = vmul.f32 %v60_v31, %v55_v39  ;;  %v74_v1 = vmul.f32 %v64_v32, %v55_v39  ;;  %v75_v2 = vmul.f32 %v68_v35, %v55_v39 }
  0x96   :  { %v76_v3 = vmul.f32 %v72_v36, %v55_v39  ;;  %v125_v10 = vmul.f32 %v112_v37, %v107_v41  ;;  %v126_v11 = vmul.f32 %v116_v38, %v107_v41  ;;  %v128_v12 = vmul.f32 %v124_v40, %v107_v41 }
  0x99   :  { %v79_v4 = vpop.permute.xlu0 %78  ;;  %v135_v5 = vpop.permute.xlu1 %134 }
  0x9a   :  { %v97_v6 = vmul.f32 %v84_v43, %v79_v4  ;;  %v98_v7 = vmul.f32 %v88_v42, %v79_v4  ;;  %v99_v8 = vmul.f32 %v92_v44, %v79_v4  ;;  %v100_v9 = vmul.f32 %v96_v45, %v79_v4 }
  0x9b   :  { %v155_v13 = vmul.f32 %v148_v49, %v135_v5  ;;  %v153_v18 = vmul.f32 %v140_v46, %v135_v5  ;;  %v154_v19 = vmul.f32 %v144_v48, %v135_v5  ;;  %v156_v20 = vmul.f32 %v152_v52, %v135_v5 }
  0x9c   :  { %v101_v14 = vadd.f32 %v97_v6, %v73_v0  ;;  %v102_v15 = vadd.f32 %v98_v7, %v74_v1  ;;  %v103_v16 = vadd.f32 %v99_v8, %v75_v2  ;;  %v104_v17 = vadd.f32 %v100_v9, %v76_v3  ;;  %v327_v8 = vld [vmem:[#allocation2 + $0x240] sm:$0xff]  ;;  %v329_v9 = vld [vmem:[#allocation2 + $0x250] sm:$0xff] }
  0x9d   :  { %v926_v6 = vpack.c.bf16 %v325_v51, %v323_v47  ;;  %v363_v47 = vld [vmem:[#allocation2 + $0x360] sm:$0xff]  ;;  %v365_v51 = vld [vmem:[#allocation2 + $0x370] sm:$0xff] }
  0x9e   :  { %v163_v22 = vpop.permute.xlu1 %162  ;;  %v129_v24 = vadd.f32 %v125_v10, %v101_v14  ;;  %v130_v25 = vadd.f32 %v126_v11, %v102_v15  ;;  %v131_v26 = vadd.f32 %v127_v50, %v103_v16  ;;  %v132_v27 = vadd.f32 %v128_v12, %v104_v17  ;;  %v191_v30 = vpop.permute.xlu0 %190  ;;  %v332_v10 = vld [vmem:[#allocation2 + $0x268] sm:$0xff]  ;;  %v334_v11 = vld [vmem:[#allocation2 + $0x278] sm:$0xff]  ;;  %v331_v14 = vld [vmem:[#allocation2 + $0x260] sm:$0xff] }
  0x9f   :  { %v181_v31 = vmul.f32 %v168_v53, %v163_v22  ;;  %v182_v32 = vmul.f32 %v172_v55, %v163_v22  ;;  %v183_v33 = vmul.f32 %v176_v56, %v163_v22  ;;  %v184_v34 = vmul.f32 %v180_v57, %v163_v22  ;;  %v319_v56 = vld [vmem:[#allocation2 + $0x200] sm:$0xff]  ;;  %v321_v57 = vld [vmem:[#allocation2 + $0x210] sm:$0xff]  ;;  %v336_v16 = vld [vmem:[#allocation2 + $0x288] sm:$0xff] }
  0xa0   :  { %v157_v35 = vadd.f32 %v153_v18, %v129_v24  ;;  %v158_v36 = vadd.f32 %v154_v19, %v130_v25  ;;  %v159_v37 = vadd.f32 %v155_v13, %v131_v26  ;;  %v160_v38 = vadd.f32 %v156_v20, %v132_v27  ;;  %v333_v15 = vld [vmem:[#allocation2 + $0x270] sm:$0xff]  ;;  %v338_v17 = vld [vmem:[#allocation2 + $0x298] sm:$0xff]  ;;  %v335_v20 = vld [vmem:[#allocation2 + $0x280] sm:$0xff] }
  0xa1   :  { %v209_v39 = vmul.f32 %v196_v58, %v191_v30  ;;  %v210_v40 = vmul.f32 %v200_v59, %v191_v30  ;;  %v211_v41 = vmul.f32 %v204_v60, %v191_v30  ;;  %v212_v43 = vmul.f32 %v208_v61, %v191_v30  ;;  %v324_v59 = vld [vmem:[#allocation2 + $0x228] sm:$0xff]  ;;  %v326_v60 = vld [vmem:[#allocation2 + $0x238] sm:$0xff]  ;;  %v339_v27 = vld [vmem:[#allocation2 + $0x2a0] sm:$0xff] }
  0xa2   :  { %v185_v42 = vadd.f32 %v181_v31, %v157_v35  ;;  %v186_v29 = vadd.f32 %v182_v32, %v158_v36  ;;  %v187_v44 = vadd.f32 %v183_v33, %v159_v37  ;;  %v188_v45 = vadd.f32 %v184_v34, %v160_v38  ;;  %v340_v22 = vld [vmem:[#allocation2 + $0x2a8] sm:$0xff]  ;;  %v342_v24 = vld [vmem:[#allocation2 + $0x2b8] sm:$0xff]  ;;  %v341_v30 = vld [vmem:[#allocation2 + $0x2b0] sm:$0xff] }
  0xa3   :  { %v922_v1 = vpack.c.bf16 %v321_v57, %v319_v56  ;;  %v924_v5 = vpack.c.bf16 %v326_v60, %v324_v59  ;;  %v930_v12 = vpack.c.bf16 %v329_v9, %v327_v8  ;;  %v932_v13 = vpack.c.bf16 %v334_v11, %v332_v10  ;;  %v344_v31 = vld [vmem:[#allocation2 + $0x2c8] sm:$0xff]  ;;  %v346_v32 = vld [vmem:[#allocation2 + $0x2d8] sm:$0xff]  ;;  %v343_v35 = vld [vmem:[#allocation2 + $0x2c0] sm:$0xff] }
  0xa4   :  { %v213_v46 = vadd.f32 %v209_v39, %v185_v42  ;;  %v214_v48 = vadd.f32 %v210_v40, %v186_v29  ;;  %v215_v49 = vadd.f32 %v211_v41, %v187_v44  ;;  %v216_v50 = vadd.f32 %v212_v43, %v188_v45  ;;  %v345_v36 = vld [vmem:[#allocation2 + $0x2d0] sm:$0xff]  ;;  %v348_v37 = vld [vmem:[#allocation2 + $0x2e8] sm:$0xff]  ;;  %v350_v38 = vld [vmem:[#allocation2 + $0x2f8] sm:$0xff] }
  0xa5   :  { %v934_v18 = vpack.c.bf16 %v333_v15, %v331_v14  ;;  %v936_v19 = vpack.c.bf16 %v338_v17, %v336_v16  ;;  %v940_v26 = vpack.c.bf16 %v342_v24, %v340_v22  ;;  %v942_v33 = vpack.c.bf16 %v341_v30, %v339_v27  ;;  %v347_v41 = vld [vmem:[#allocation2 + $0x2e0] sm:$0xff]  ;;  %v349_v43 = vld [vmem:[#allocation2 + $0x2f0] sm:$0xff]  ;;  %v352_v42 = vld [vmem:[#allocation2 + $0x308] sm:$0xff] }
  0xa6   :  { %v1365_v52 = vadd.f32 %v230_v54, %v215_v49  ;;  %v240_v53 = vadd.f32 %v226_v62, %v214_v48  ;;  %v239_v55 = vadd.f32 %v222_v63, %v213_v46  ;;  %v242_v58 = vadd.f32 %v234_v21, %v216_v50  ;;  %v328_v54 = vld [vmem:[#allocation2 + $0x248] sm:$0xff]  ;;  %v330_v62 = vld [vmem:[#allocation2 + $0x258] sm:$0xff]  ;;  %v337_v21 = vld [vmem:[#allocation2 + $0x290] sm:$0xff] }
  0xa7   :  { %v928_v7 = vpack.c.bf16 %v330_v62, %v328_v54  ;;  %v938_v25 = vpack.c.bf16 %v337_v21, %v335_v20  ;;  %v944_v34 = vpack.c.bf16 %v346_v32, %v344_v31  ;;  %v946_v39 = vpack.c.bf16 %v345_v36, %v343_v35  ;;  %v354_v29 = vld [vmem:[#allocation2 + $0x318] sm:$0xff]  ;;  %v351_v46 = vld [vmem:[#allocation2 + $0x300] sm:$0xff]  ;;  %v353_v48 = vld [vmem:[#allocation2 + $0x310] sm:$0xff] }
  0xa8   :  { %vm244_vm0 = vcmp.gt.f32.partialorder %v240_v53, 0.0  ;;  %v248_v61 = vmul.f32 0.1, %v240_v53  ;;  %vm243_vm1 = vcmp.gt.f32.partialorder %v239_v55, 0.0  ;;  %v247_v0 = vmul.f32 0.1, %v239_v55 }
  0xa9   :  { %vm246_vm2 = vcmp.gt.f32.partialorder %v242_v58, 0.0  ;;  %v250_v2 = vmul.f32 0.1, %v242_v58  ;;  %v948_v40 = vpack.c.bf16 %v350_v38, %v348_v37  ;;  %v950_v44 = vpack.c.bf16 %v349_v43, %v347_v41  ;;  %v356_v49 = vld [vmem:[#allocation2 + $0x328] sm:$0xff]  ;;  %v358_v50 = vld [vmem:[#allocation2 + $0x338] sm:$0xff]  ;;  %v355_v56 = vld [vmem:[#allocation2 + $0x320] sm:$0xff] }
  0xaa   :  { %v252_v3 = vsel %vm244_vm0, %v240_v53, %v248_v61  ;;  %v251_v4 = vsel %vm243_vm1, %v239_v55, %v247_v0  ;;  %v952_v45 = vpack.c.bf16 %v354_v29, %v352_v42  ;;  %v954_v53 = vpack.c.bf16 %v353_v48, %v351_v46  ;;  %v357_v57 = vld [vmem:[#allocation2 + $0x330] sm:$0xff]  ;;  %v362_v59 = vld [vmem:[#allocation2 + $0x358] sm:$0xff]  ;;  %v359_v0 = vld [vmem:[#allocation2 + $0x340] sm:$0xff] }
  0xab   :  { %459 = vmatprep.mubr.f32.mxu0 %v252_v3  ;;  %v254_v63 = vsel %vm246_vm2, %v242_v58, %v250_v2  ;;  %v956_v55 = vpack.c.bf16 %v358_v50, %v356_v49  ;;  %v360_v58 = vld [vmem:[#allocation2 + $0x348] sm:$0xff]  ;;  %v958_v60 = vpack.c.bf16 %v357_v57, %v355_v56  ;;  %v366_v3 = vld [vmem:[#allocation2 + $0x378] sm:$0xff]  ;;  %v369_v8 = vld [vmem:[#allocation2 + $0x390] sm:$0xff]  ;;  %v249_v31 = vmul.f32 0.1, %v1365_v52 }
  0xac   :  { %460 = vmatmul.mubr.f32.vlgmr.msra.gmra.mrb[0].mxu0 %v251_v4  ;;  %v960_v61 = vpack.c.bf16 %v362_v59, %v360_v58  ;;  %v364_v2 = vld [vmem:[#allocation2 + $0x368] sm:$0xff]  ;;  %v370_v62 = vld [vmem:[#allocation2 + $0x398] sm:$0xff]  ;;  %v373_v14 = vld [vmem:[#allocation2 + $0x3b0] sm:$0xff]  ;;  %vm245_vm3 = vcmp.gt.f32.partialorder %v1365_v52, 0.0  ;;  %v1120_v29 = vmov 0.0|0.0  }
  0xad   :  { %923 = vmatpush1.bf16.msra.mxu0 %v922_v1  ;;  %530 = vmatprep.mubr.f32.mxu0 %v254_v63  ;;  %v361_v1 = vld [vmem:[#allocation2 + $0x350] sm:$0xff]  ;;  %v368_v54 = vld [vmem:[#allocation2 + $0x388] sm:$0xff]  ;;  %v966_v63 = vpack.c.bf16 %v365_v51, %v363_v47  ;;  %v374_v10 = vld [vmem:[#allocation2 + $0x3b8] sm:$0xff]  ;;  %v253_v32 = vsel %vm245_vm3, %v1365_v52, %v249_v31 }
  0xae   :  { %925 = vmatprep.subr.bf16.mxu0 %v924_v5  ;;  %v962_v4 = vpack.c.bf16 %v361_v1, %v359_v0  ;;  %v964_v5 = vpack.c.bf16 %v366_v3, %v364_v2  ;;  %v372_v9 = vld [vmem:[#allocation2 + $0x3a8] sm:$0xff]  ;;  %v378_v16 = vld [vmem:[#allocation2 + $0x3d8] sm:$0xff]  ;;  %v377_v20 = vld [vmem:[#allocation2 + $0x3d0] sm:$0xff] }
  0xaf   :  { %v376_v15 = vld [vmem:[#allocation2 + $0x3c8] sm:$0xff]  ;;  %v382_v22 = vld [vmem:[#allocation2 + $0x3f8] sm:$0xff]  ;;  %v381_v27 = vld [vmem:[#allocation2 + $0x3f0] sm:$0xff] }
  0xb0   :  { %v380_v21 = vld [vmem:[#allocation2 + $0x3e8] sm:$0xff]  ;;  %v555_v36 = vld [vmem:[%s1470_s5 + $0x60] sm:$0xff]  ;;  %v573_v52 = vld [vmem:[%s1470_s5 + $0xf0] sm:$0xff] }
  0xb1   :  { %927 = vmatpush1.bf16.msra.mxu0 %v926_v6  ;;  %v968_v6 = vpack.c.bf16 %v370_v62, %v368_v54  ;;  %v556_v37 = vld [vmem:[%s1470_s5 + $0x68] sm:$0xff]  ;;  %v557_v41 = vld [vmem:[%s1470_s5 + $0x70] sm:$0xff]  ;;  %v558_v43 = vld [vmem:[%s1470_s5 + $0x78] sm:$0xff] }
  0xb2   :  { %929 = vmatprep.subr.bf16.mxu0 %v928_v7  ;;  %v367_v7 = vld [vmem:[#allocation2 + $0x380] sm:$0xff]  ;;  %v1010_v38 = vpack.c.bf16 %v556_v37, %v555_v36  ;;  %v1014_v42 = vpack.c.bf16 %v558_v43, %v557_v41  ;;  %v656_v56 = vld [vmem:[%s1472_s7 + $0x8] sm:$0xff] }
  0xb3   :  { %v970_v11 = vpack.c.bf16 %v369_v8, %v367_v7  ;;  %v659_v1 = vld [vmem:[%s1472_s7 + $0x20] sm:$0xff]  ;;  %v660_v2 = vld [vmem:[%s1472_s7 + $0x28] sm:$0xff] }
  0xb4   :  { %v1023_v3 = vpack.c.bf16 %v660_v2, %v659_v1  ;;  %v663_v51 = vld [vmem:[%s1472_s7 + $0x40] sm:$0xff]  ;;  %v664_v54 = vld [vmem:[%s1472_s7 + $0x48] sm:$0xff] }
  0xb5   :  { %931 = vmatpush1.bf16.msra.mxu0 %v930_v12  ;;  %v972_v12 = vpack.c.bf16 %v374_v10, %v372_v9  ;;  %v1029_v62 = vpack.c.bf16 %v664_v54, %v663_v51  ;;  %v667_v8 = vld [vmem:[%s1472_s7 + $0x60] sm:$0xff]  ;;  %v668_v9 = vld [vmem:[%s1472_s7 + $0x68] sm:$0xff] }
  0xb6   :  { %933 = vmatprep.subr.bf16.mxu0 %v932_v13  ;;  %v371_v13 = vld [vmem:[#allocation2 + $0x3a0] sm:$0xff]  ;;  %v1035_v10 = vpack.c.bf16 %v668_v9, %v667_v8 }
  0xb7   :  { %v974_v17 = vpack.c.bf16 %v373_v14, %v371_v13  ;;  %v1122_v14 = vmov 0.0  }
  0xb9   :  { %935 = vmatpush1.bf16.msra.mxu0 %v934_v18  ;;  %v976_v18 = vpack.c.bf16 %v378_v16, %v376_v15  ;;  %v767_v16 = vld [vmem:[%s1471_s6] ss:$0 sm:$0xff] }
  0xba   :  { %937 = vmatprep.subr.bf16.mxu0 %v936_v19  ;;  %v375_v19 = vld [vmem:[#allocation2 + $0x3c0] sm:$0xff] }
  0xbb   :  { %v978_v24 = vpack.c.bf16 %v377_v20, %v375_v19 }
  0xbd   :  { %939 = vmatpush1.bf16.msra.mxu0 %v938_v25  ;;  %v980_v25 = vpack.c.bf16 %v382_v22, %v380_v21  ;;  %v768_v22 = vld [vmem:[%s1473_s8] ss:$0 sm:$0xff] }
  0xbe   :  { %941 = vmatprep.subr.bf16.mxu0 %v940_v26  ;;  %v379_v26 = vld [vmem:[#allocation2 + $0x3e0] sm:$0xff] }
  0xbf   :  { %v982_v30 = vpack.c.bf16 %v381_v27, %v379_v26 }
  0xc1   :  { %943 = vmatpush1.bf16.msra.mxu0 %v942_v33  ;;  %v571_v33 = vld [vmem:[%s1470_s5 + $0xe0] sm:$0xff] }
  0xc2   :  { %945 = vmatprep.subr.bf16.mxu0 %v944_v34  ;;  %v572_v34 = vld [vmem:[%s1470_s5 + $0xe8] sm:$0xff] }
  0xc3   :  { %v1008_v35 = vpack.c.bf16 %v572_v34, %v571_v33 }
  0xc5   :  { %947 = vmatpush1.bf16.msra.mxu0 %v946_v39  ;;  %1009 = vmatprep.subr.bf16.mxu1 %v1008_v35  ;;  %v574_v39 = vld [vmem:[%s1470_s5 + $0xf8] sm:$0xff] }
  0xc6   :  { %949 = vmatprep.subr.bf16.mxu0 %v948_v40  ;;  %1011 = vmatpush3.bf16.msra.mxu1 %v1010_v38  ;;  %v1012_v40 = vpack.c.bf16 %v574_v39, %v573_v52 }
  0xc8   :  { %1013 = vmatprep.subr.bf16.mxu1 %v1012_v40 }
  0xc9   :  { %951 = vmatpush1.bf16.msra.mxu0 %v950_v44  ;;  %v383_v44 = vld [vmem:[%s1469_s4] sm:$0x3] }
  0xca   :  { %953 = vmatprep.subr.bf16.mxu0 %v952_v45  ;;  %1015 = vmatpush3.bf16.msra.mxu1 %v1014_v42  ;;  %v388_v45 = vrot.slane %v383_v44, %v1274_v23  ;;  %v392_v46 = vrot.slane %v383_v44, %v1297_v28  ;;  %v657_v28 = vld [vmem:[%s1472_s7 + $0x10] sm:$0xff] }
  0xcb   :  { %1016 = vmatprep.subr.bf16.mxu1 %v1120_v29 }
  0xcd   :  { %955 = vmatpush1.bf16.msra.mxu0 %v954_v53 }
  0xce   :  { %957 = vmatprep.subr.bf16.mxu0 %v956_v55  ;;  %v655_v55 = vld [vmem:[%s1472_s7] sm:$0xff] }
  0xcf   :  { %v1017_v59 = vpack.c.bf16 %v656_v56, %v655_v55 }
  0xd1   :  { %959 = vmatpush1.bf16.msra.mxu0 %v958_v60  ;;  %v658_v60 = vld [vmem:[%s1472_s7 + $0x18] sm:$0xff] }
  0xd2   :  { %961 = vmatprep.subr.bf16.mxu0 %v960_v61  ;;  %v1020_v0 = vpack.c.bf16 %v658_v60, %v657_v28 }
  0xd5   :  { %963 = vmatpush1.bf16.msra.mxu0 %v962_v4  ;;  %v661_v4 = vld [vmem:[%s1472_s7 + $0x30] sm:$0xff] }
  0xd6   :  { %965 = vmatprep.subr.bf16.mxu0 %v964_v5  ;;  %v662_v5 = vld [vmem:[%s1472_s7 + $0x38] sm:$0xff] }
  0xd7   :  { %v1026_v47 = vpack.c.bf16 %v662_v5, %v661_v4 }
  0xd9   :  { %967 = vmatpush1.bf16.msra.mxu0 %v966_v63  ;;  %v665_v63 = vld [vmem:[%s1472_s7 + $0x50] sm:$0xff] }
  0xda   :  { %969 = vmatprep.subr.bf16.mxu0 %v968_v6  ;;  %v666_v6 = vld [vmem:[%s1472_s7 + $0x58] sm:$0xff] }
  0xdb   :  { %v1032_v7 = vpack.c.bf16 %v666_v6, %v665_v63 }
  0xdd   :  { %971 = vmatpush1.bf16.msra.mxu0 %v970_v11  ;;  %v669_v11 = vld [vmem:[%s1472_s7 + $0x70] sm:$0xff] }
  0xde   :  { %973 = vmatprep.subr.bf16.mxu0 %v972_v12  ;;  %v670_v12 = vld [vmem:[%s1472_s7 + $0x78] sm:$0xff]  ;;  %s1123_s7 = smov [#allocation5]  }
  0xdf   :  { %v1038_v13 = vpack.c.bf16 %v670_v12, %v669_v11  ;;  %s758_s1 = sshll.u32 %s1123_s7, 4  ;;  %s759_s1 = int_to_ptr.vmem [resolvable:$true] %s758_s1 }
  0xe0   :  { %s1085_s6 = scalar_lea.vmem %s759_s1, 128  ;;  %p1090_p9 = scmp.lt.s32.totalorder %s759_s1, %s759_s1 }
  0xe1   :  { %975 = vmatpush1.bf16.msra.mxu0 %v974_v17  ;;  %p1086_p8 = scmp.ne.s32.totalorder %s759_s1, %s1085_s6  ;;  %p1091_p10 = scmp.lt.s32.totalorder %s1085_s6, %s1085_s6 }
  0xe2   :  { %977 = vmatprep.subr.bf16.mxu0 %v976_v18 }
  0xe3   :  { %p1092_p11 = por %p1091_p10, %p1090_p9 }
  0xe5   :  { %979 = vmatpush1.bf16.msra.mxu0 %v978_v24  ;;  %p1093_p12 = pnand %p1092_p11, %p1086_p8 }
  0xe6   :  { %981 = vmatprep.subr.bf16.mxu0 %v980_v25 }
  0xe9   :  { %983 = vmatpush1.bf16.msra.mxu0 %v982_v30 }
  0xec   :  { %531 = vmatmul.mubr.f32.vlgmr.msra.gmra.mrb[0].mxu0 %v253_v32 }
 0x1bf   :  { %v532_v48 = vpop.f32.mrb[0].mxu0 }
 0x1c0   :  { %v1040_v49 = vadd.f32 %v532_v48, %v388_v45  ;;  %v534_v50 = vpop.f32.mrb[1].mxu0 }
 0x1c1   :  { %v1041_v53 = vadd.f32 %v534_v50, %v392_v46 }
 0x1c2   :  { %v539_v57 = vmul.f32 0.1, %v1040_v49  ;;  %vm537_vm5 = vcmp.gt.f32.partialorder %v1040_v49, 0.0 }
 0x1c3   :  { %vm538_vm4 = vcmp.gt.f32.partialorder %v1041_v53, 0.0  ;;  %v540_v58 = vmul.f32 0.1, %v1041_v53 }
 0x1c4   :  { %v541_v61 = vsel %vm537_vm5, %v1040_v49, %v539_v57 }
 0x1c5   :  { %v542_v23 = vsel %vm538_vm4, %v1041_v53, %v540_v58 }
 0x1c6   :  { %646 = vmatprep.mubr.f32.mxu1 %v542_v23 }
 0x1c7   :  { %647 = vmatmul.mubr.f32.vlgmr.msra.gmra.mrb[0].mxu1 %v541_v61 }
 0x1c8   :  { %1018 = vmatpush3.bf16.msra.mxu1 %v1017_v59  ;;  %853 = vmatprep.mubr.msk.f32.mxu1 %vm1121_vm6, %v1122_v14 }
 0x1c9   :  { %1019 = vmatprep.subr.bf16.mxu1 %v1120_v29 }
 0x1cc   :  { %1021 = vmatpush3.bf16.msra.mxu1 %v1020_v0 }
 0x1cd   :  { %1022 = vmatprep.subr.bf16.mxu1 %v1120_v29 }
 0x1d0   :  { %1024 = vmatpush3.bf16.msra.mxu1 %v1023_v3 }
 0x1d1   :  { %1025 = vmatprep.subr.bf16.mxu1 %v1120_v29 }
 0x1d4   :  { %1027 = vmatpush3.bf16.msra.mxu1 %v1026_v47 }
 0x1d5   :  { %1028 = vmatprep.subr.bf16.mxu1 %v1120_v29 }
 0x1d8   :  { %1030 = vmatpush3.bf16.msra.mxu1 %v1029_v62 }
 0x1d9   :  { %1031 = vmatprep.subr.bf16.mxu1 %v1120_v29 }
 0x1dc   :  { %1033 = vmatpush3.bf16.msra.mxu1 %v1032_v7 }
 0x1dd   :  { %1034 = vmatprep.subr.bf16.mxu1 %v1120_v29 }
 0x1e0   :  { %1036 = vmatpush3.bf16.msra.mxu1 %v1035_v10 }
 0x1e1   :  { %1037 = vmatprep.subr.bf16.mxu1 %v1120_v29 }
 0x1e4   :  { %1039 = vmatpush3.bf16.msra.mxu1 %v1038_v13 }
 0x29a   :  { %v801_v15 = vpop.f32.mrb[0].mxu1 }
 0x29b   :  { %v802_v17 = vpop.f32.mrb[1].mxu1 }
 0x29c   :  { %v803_v18 = vadd.f32 %v802_v17, %v801_v15 }
 0x29e   :  { %v649_v19 = vadd.f32 %v803_v18, %v767_v16 }
 0x2a0   :  { %v653_v20 = vmul.f32 0.1, %v649_v19  ;;  %vm652_vm7 = vcmp.gt.f32.partialorder %v649_v19, 0.0 }
 0x2a2   :  { %v654_v21 = vsel %vm652_vm7, %v649_v19, %v653_v20 }
 0x2a3   :  { %854 = vmatmul.mubr.f32.vlgmr.msra.gmra.mrb[2].mxu1 %v654_v21 }
 0x376   :  { %v744_v24 = vpop.f32.mrb[2].mxu1 }
 0x377   :  { %v745_v25 = vadd.f32 %v768_v22, %v744_v24  ;;  %v855_v26 = vpop.f32.mrb[3].mxu1 }
 0x379   :  { %v749_v27 = vmul.f32 0.1, %v745_v25  ;;  %vm748_vm8 = vcmp.gt.f32.partialorder %v745_v25, 0.0 }
 0x37b   :  { %v750_v30 = vsel %vm748_vm8, %v745_v25, %v749_v27 }
 0x37c   :  { %751 = vst [vmem:[#allocation5] sm:$0xff] %v750_v30 }
 0x37d   :  { %1096 = shalt.err (!%p1093_p12)
}
 0x37e   :  { %s1097_s8 = scalar_lea.hbm %s1474_s9, 128 }
 0x37f   :  { %p1098_p13 = scmp.ne.s32.totalorder %s1474_s9, %s1097_s8  ;;  %p1101_p0 = scmp.lt.u32.totalorder %s1097_s8, %s1474_s9 }
 0x381   :  { %p1103_p1 = pnand %p1101_p0, %p1098_p13 }
 0x383   :  { %1106 = shalt.err (!%p1103_p1)
}
 0x384   :  { %761 = dma.vmem_to_hbm [thread:$0]  %s759_s1, 128, %s1474_s9, [#allocation4]  }
 0x385   :  { %1109 = dma.done.wait [#allocation4], 128  }
 0x386   :  { %1110 = vsyncadd [#allocation4], 4294967168 }
 0x387   :  { %765 = vsyncpa [#allocation3], 1 }
 0x388   :  { %766 = vsyncpa [#allocation4], 1 }

</bundles_post_ra>
